<compile_context>
chip_gen: v7x
topology: tpu7x:2x2x1
jax: 0.10.0
libtpu: 0.0.40
codegen_flags: <defaults>
</compile_context>

<pallas_src>
import math

import jax
import jax.numpy as jnp
from jax import lax
from jax.experimental import pallas as pl
from jax.experimental.pallas import tpu as pltpu


# ---------------------------------------------------------------------------
# config (small, deterministic)
# ---------------------------------------------------------------------------
VOCAB = 20
PADDING_ID = 0
EMBED_DIM = 16
HIDDEN_DIM = 32
ATTN_DIM = 16
TAG_DIM = 8
BATCH = 2
SEQ = 8
KW = 3  # conv kernel size (padding=1 -> "same")

BS = BATCH * SEQ                      # 16 flattened positions
KV = KW * VOCAB                       # 60: one-hot width (tap-offset vocab)
KE = KW * EMBED_DIM                   # 48: im2col embed width
BIAS_DIM = HIDDEN_DIM + 2 * ATTN_DIM + TAG_DIM  # 72 packed biases

assert SEQ & (SEQ - 1) == 0, "SEQ must be a power of two (block-mask uses shifts)"
LOG2_SEQ = SEQ.bit_length() - 1


# ---------------------------------------------------------------------------
# kernel: gather+im2col -> conv -> relu -> self-attention -> linear
# Single invocation, whole batch flattened to (B*SEQ, ...) rows.
# ---------------------------------------------------------------------------
def cnn_attn_kernel(tok_ref,    # (BS, KW) int32: tap-offset token windows (t*VOCAB + id)
                    emb3_ref,   # (KW*VOCAB, KW*EMBED) block-diag embedding table
                    wc_ref,     # (KW*EMBED, HIDDEN) im2col conv weight
                    wpost_ref,  # (HIDDEN, 2*ATTN + TAG) = Wq | Wk | Wl
                    b_ref,      # (1, HIDDEN + 2*ATTN + TAG) = bc | bq | bk | bl
                    out_ref):   # (BS, TAG)
    # --- fused embedding gather + conv im2col via one-hot matmul -------------
    col = lax.broadcasted_iota(jnp.int32, (BS, KV), 1)
    oh = ((col == tok_ref[:, 0:1]) |
          (col == tok_ref[:, 1:2]) |
          (col == tok_ref[:, 2:3])).astype(jnp.float32)            # (BS, KW*VOCAB)
    x_cat = jnp.dot(oh, emb3_ref[...],
                    preferred_element_type=jnp.float32)            # (BS, KW*EMBED)

    # --- Conv1d(E, H, k=3, padding=1) as a single matmul, + bias, relu -------
    bc = b_ref[:, 0:HIDDEN_DIM]
    h = jnp.dot(x_cat, wc_ref[...], preferred_element_type=jnp.float32) + bc
    h = jnp.maximum(h, 0.0)                                        # (BS, HIDDEN)

    # --- AttnLayer: fused Q|K projection, per-batch softmax attention --------
    wqk = wpost_ref[:, 0:2 * ATTN_DIM]
    wl = wpost_ref[:, 2 * ATTN_DIM:2 * ATTN_DIM + TAG_DIM]
    bqk = b_ref[:, HIDDEN_DIM:HIDDEN_DIM + 2 * ATTN_DIM]
    bl = b_ref[:, HIDDEN_DIM + 2 * ATTN_DIM:BIAS_DIM]

    qk = jnp.dot(h, wqk, preferred_element_type=jnp.float32) + bqk  # (BS, 2*ATTN)
    q = qk[:, 0:ATTN_DIM]
    k = qk[:, ATTN_DIM:2 * ATTN_DIM]

    # contract last dims directly (no explicit k.T / XLU transpose)
    scores = lax.dot_general(q, k, (((1,), (1,)), ((), ())),
                             preferred_element_type=jnp.float32)    # (BS, BS)
    scores = scores * (1.0 / math.sqrt(ATTN_DIM))

    # block-diagonal mask so flattened-batch attention == per-batch attention
    r = lax.shift_right_logical(lax.broadcasted_iota(jnp.int32, (BS, BS), 0), LOG2_SEQ)
    c = lax.shift_right_logical(lax.broadcasted_iota(jnp.int32, (BS, BS), 1), LOG2_SEQ)
    scores = jnp.where(r == c, scores, -1e30)

    m = jnp.max(scores, axis=-1, keepdims=True)
    p = jnp.exp(scores - m)
    alpha = p * pl.reciprocal(jnp.sum(p, axis=-1, keepdims=True), approx=True)
    attn = jnp.dot(alpha, h, preferred_element_type=jnp.float32)    # (BS, HIDDEN)

    # --- final Linear(hidden_dim -> tag_dim) ---------------------------------
    out_ref[...] = jnp.dot(attn, wl, preferred_element_type=jnp.float32) + bl


# ---------------------------------------------------------------------------
# wrapper: layout-only packing in JAX, one pallas_call for the whole batch
# ---------------------------------------------------------------------------
def cnn_attn_forward(x_tokens, params):
    """x_tokens: int32 (BATCH, SEQ).  Returns float32 (BATCH, SEQ, TAG_DIM)."""
    B, S = x_tokens.shape
    emb = params["embedding"]                                        # (VOCAB, E)

    # Token-level im2col windows with "same" padding. Padding with PADDING_ID is
    # identical to zero-padding the embedded sequence (padding_idx row is zero).
    tok_pad = jnp.pad(x_tokens, ((0, 0), (1, 1)), constant_values=PADDING_ID)
    tok_win = jnp.stack([tok_pad[:, t:t + S] + t * VOCAB for t in range(KW)], axis=-1)
    tok_win = tok_win.reshape(B * S, KW).astype(jnp.int32)           # (B*S, KW)

    # Weight packing: pure layout (no FLOPs).
    emb3 = jax.scipy.linalg.block_diag(*([emb] * KW))                # (KW*V, KW*E)
    wc_flat = params["conv_w"].reshape(KW * EMBED_DIM, HIDDEN_DIM)   # (48, 32)
    w_post = jnp.concatenate(
        [params["wq"], params["wk"], params["wl"]], axis=1)          # (32, 40)
    bias = jnp.concatenate(
        [params["conv_b"], params["bq"], params["bk"], params["bl"]], axis=1)  # (1, 72)

    cost = pl.CostEstimate(
        flops=2 * (BS * KV * KE                       # gather/im2col
                   + BS * KE * HIDDEN_DIM             # conv
                   + BS * HIDDEN_DIM * 2 * ATTN_DIM   # q|k projection
                   + BS * ATTN_DIM * BS               # scores
                   + BS * BS * HIDDEN_DIM             # alpha @ h
                   + BS * HIDDEN_DIM * TAG_DIM),      # final linear
        transcendentals=BS * BS + BS,
        bytes_accessed=4 * (tok_win.size + emb3.size + wc_flat.size
                            + w_post.size + bias.size + BS * TAG_DIM),
    )

    full = lambda shape: pl.BlockSpec(shape, lambda i: (0,) * len(shape))

    out_flat = pl.pallas_call(
        cnn_attn_kernel,
        out_shape=jax.ShapeDtypeStruct((B * S, TAG_DIM), jnp.float32),
        grid=(1,),
        in_specs=[
            full((B * S, KW)),
            full((KW * VOCAB, KW * EMBED_DIM)),
            full((KW * EMBED_DIM, HIDDEN_DIM)),
            full((HIDDEN_DIM, 2 * ATTN_DIM + TAG_DIM)),
            full((1, BIAS_DIM)),
        ],
        out_specs=full((B * S, TAG_DIM)),
        compiler_params=pltpu.CompilerParams(dimension_semantics=("arbitrary",)),
        cost_estimate=cost,
    )(tok_win, emb3, wc_flat, w_post, bias)

    return out_flat.reshape(B, S, TAG_DIM)


# ---------------------------------------------------------------------------
# pure-JAX reference (same assumed CNNLayer/AttnLayer semantics)
# ---------------------------------------------------------------------------
def cnn_attn_reference(x_tokens, params):
    emb = params["embedding"][x_tokens]                              # (B,S,E)
    xp = jnp.pad(emb, ((0, 0), (1, 1), (0, 0)))
    h = (jnp.einsum("bse,eh->bsh", xp[:, 0:SEQ], params["conv_w"][0])
         + jnp.einsum("bse,eh->bsh", xp[:, 1:SEQ + 1], params["conv_w"][1])
         + jnp.einsum("bse,eh->bsh", xp[:, 2:SEQ + 2], params["conv_w"][2])
         + params["conv_b"][0])
    h = jnp.maximum(h, 0.0)
    q = jnp.einsum("bsh,ha->bsa", h, params["wq"]) + params["bq"][0]
    k = jnp.einsum("bsh,ha->bsa", h, params["wk"]) + params["bk"][0]
    s = jnp.einsum("bqa,bka->bqk", q, k) / math.sqrt(ATTN_DIM)
    a = jax.nn.softmax(s, axis=-1)
    attn = jnp.einsum("bqk,bkh->bqh", a, h)
    return jnp.einsum("bsh,ht->bst", attn, params["wl"]) + params["bl"][0]


# ---------------------------------------------------------------------------
# deterministic parameter init (shapes follow the module's __init__)
# ---------------------------------------------------------------------------
def init_params(key):
    keys = jax.random.split(key, 9)
    scale = 0.1
    embedding = scale * jax.random.normal(keys[0], (VOCAB, EMBED_DIM), jnp.float32)
    embedding = embedding.at[PADDING_ID].set(0.0)   # nn.Embedding padding_idx row = 0
    return {
        "embedding": embedding,
        # torch Conv1d weight is (H, E, KW); stored tap-major (KW, E, H).
        "conv_w": scale * jax.random.normal(keys[1], (KW, EMBED_DIM, HIDDEN_DIM), jnp.float32),
        "conv_b": scale * jax.random.normal(keys[2], (1, HIDDEN_DIM), jnp.float32),
        "wq": scale * jax.random.normal(keys[3], (HIDDEN_DIM, ATTN_DIM), jnp.float32),
        "bq": scale * jax.random.normal(keys[4], (1, ATTN_DIM), jnp.float32),
        "wk": scale * jax.random.normal(keys[5], (HIDDEN_DIM, ATTN_DIM), jnp.float32),
        "bk": scale * jax.random.normal(keys[6], (1, ATTN_DIM), jnp.float32),
        "wl": scale * jax.random.normal(keys[7], (HIDDEN_DIM, TAG_DIM), jnp.float32),
        "bl": scale * jax.random.normal(keys[8], (1, TAG_DIM), jnp.float32),
    }


if __name__ == "__main__":
    key = jax.random.PRNGKey(0)
    pkey, xkey = jax.random.split(key)
    params = init_params(pkey)
    x = jax.random.randint(xkey, (BATCH, SEQ), 0, VOCAB, dtype=jnp.int32)

    out = cnn_attn_forward(x, params)
    out = jax.block_until_ready(out)
    assert out.shape == (BATCH, SEQ, TAG_DIM)
    assert bool(jnp.all(jnp.isfinite(out)))

    ref = jax.block_until_ready(cnn_attn_reference(x, params))
    max_err = float(jnp.max(jnp.abs(out - ref)))
    assert max_err < 2e-2, f"kernel mismatch vs reference: max_err={max_err}"

    print("KERNEL_OK")
</pallas_src>

<mosaic_0001>
module attributes {stable_mosaic.version = 11 : i64} {
  func.func @cnn_attn_kernel(%arg0: i32, %arg1: memref<16x3xi32, #tpu.memory_space<vmem>>, %arg2: memref<60x48xf32, #tpu.memory_space<vmem>>, %arg3: memref<48x32xf32, #tpu.memory_space<vmem>>, %arg4: memref<32x40xf32, #tpu.memory_space<vmem>>, %arg5: memref<1x72xf32, #tpu.memory_space<vmem>>, %arg6: memref<16x8xf32, #tpu.memory_space<vmem>>) attributes {dimension_semantics = [#tpu.dimension_semantics<arbitrary>], iteration_bounds = array<i64: 1>, scalar_prefetch = 0 : i64, scratch_operands = 0 : i64, tpu.core_type = #tpu.core_type<tc>, window_params = [{pipeline_mode = #tpu.pipeline_mode<synchronous>, transform_indices = @transform_0, window_bounds = array<i64: 16, 3>}, {pipeline_mode = #tpu.pipeline_mode<synchronous>, transform_indices = @transform_1, window_bounds = array<i64: 60, 48>}, {pipeline_mode = #tpu.pipeline_mode<synchronous>, transform_indices = @transform_2, window_bounds = array<i64: 48, 32>}, {pipeline_mode = #tpu.pipeline_mode<synchronous>, transform_indices = @transform_3, window_bounds = array<i64: 32, 40>}, {pipeline_mode = #tpu.pipeline_mode<synchronous>, transform_indices = @transform_4, window_bounds = array<i64: 1, 72>}, {pipeline_mode = #tpu.pipeline_mode<synchronous>, transform_indices = @transform_5, window_bounds = array<i64: 16, 8>}]} {
    %0 = tpu.iota {dimensions = array<i32: 1>} : vector<16x60xi32>
    %c0 = arith.constant 0 : index
    %c0_0 = arith.constant 0 : index
    %1 = vector.load %arg1[%c0, %c0_0] : memref<16x3xi32, #tpu.memory_space<vmem>>, vector<16x1xi32>
    %2 = vector.broadcast %1 : vector<16x1xi32> to vector<16x60xi32>
    %3 = arith.cmpi eq, %0, %2 : vector<16x60xi32>
    %c0_1 = arith.constant 0 : index
    %c1 = arith.constant 1 : index
    %4 = vector.load %arg1[%c0_1, %c1] : memref<16x3xi32, #tpu.memory_space<vmem>>, vector<16x1xi32>
    %5 = vector.broadcast %4 : vector<16x1xi32> to vector<16x60xi32>
    %6 = arith.cmpi eq, %0, %5 : vector<16x60xi32>
    %7 = arith.ori %3, %6 : vector<16x60xi1>
    %c0_2 = arith.constant 0 : index
    %c2 = arith.constant 2 : index
    %8 = vector.load %arg1[%c0_2, %c2] : memref<16x3xi32, #tpu.memory_space<vmem>>, vector<16x1xi32>
    %9 = vector.broadcast %8 : vector<16x1xi32> to vector<16x60xi32>
    %10 = arith.cmpi eq, %0, %9 : vector<16x60xi32>
    %11 = arith.ori %7, %10 : vector<16x60xi1>
    %12 = arith.extui %11 : vector<16x60xi1> to vector<16x60xi32>
    %13 = arith.sitofp %12 : vector<16x60xi32> to vector<16x60xf32>
    %c0_3 = arith.constant 0 : index
    %c0_4 = arith.constant 0 : index
    %14 = vector.load %arg2[%c0_3, %c0_4] : memref<60x48xf32, #tpu.memory_space<vmem>>, vector<60x48xf32>
    %cst = arith.constant dense<0.000000e+00> : vector<16x48xf32>
    %15 = tpu.matmul %13, %14, %cst {dimension_numbers = #tpu.dot_dimension_numbers<[1], [0], [0], [1], [0, 0, 1, 1], [], []>} : vector<16x60xf32>, vector<60x48xf32>, vector<16x48xf32> -> vector<16x48xf32>
    %c0_5 = arith.constant 0 : index
    %c0_6 = arith.constant 0 : index
    %16 = vector.load %arg5[%c0_5, %c0_6] : memref<1x72xf32, #tpu.memory_space<vmem>>, vector<1x32xf32>
    %c0_7 = arith.constant 0 : index
    %c0_8 = arith.constant 0 : index
    %17 = vector.load %arg3[%c0_7, %c0_8] : memref<48x32xf32, #tpu.memory_space<vmem>>, vector<48x32xf32>
    %cst_9 = arith.constant dense<0.000000e+00> : vector<16x32xf32>
    %18 = tpu.matmul %15, %17, %cst_9 {dimension_numbers = #tpu.dot_dimension_numbers<[1], [0], [0], [1], [0, 0, 1, 1], [], []>} : vector<16x48xf32>, vector<48x32xf32>, vector<16x32xf32> -> vector<16x32xf32>
    %19 = vector.broadcast %16 : vector<1x32xf32> to vector<16x32xf32>
    %20 = arith.addf %18, %19 : vector<16x32xf32>
    %cst_10 = arith.constant 0.000000e+00 : f32
    %21 = vector.broadcast %cst_10 : f32 to vector<16x32xf32>
    %22 = arith.maximumf %20, %21 : vector<16x32xf32>
    %c0_11 = arith.constant 0 : index
    %c0_12 = arith.constant 0 : index
    %23 = vector.load %arg4[%c0_11, %c0_12] : memref<32x40xf32, #tpu.memory_space<vmem>>, vector<32x32xf32>
    %c0_13 = arith.constant 0 : index
    %c32 = arith.constant 32 : index
    %24 = vector.load %arg4[%c0_13, %c32] : memref<32x40xf32, #tpu.memory_space<vmem>>, vector<32x8xf32>
    %c0_14 = arith.constant 0 : index
    %c32_15 = arith.constant 32 : index
    %25 = vector.load %arg5[%c0_14, %c32_15] : memref<1x72xf32, #tpu.memory_space<vmem>>, vector<1x32xf32>
    %c0_16 = arith.constant 0 : index
    %c64 = arith.constant 64 : index
    %26 = vector.load %arg5[%c0_16, %c64] : memref<1x72xf32, #tpu.memory_space<vmem>>, vector<1x8xf32>
    %cst_17 = arith.constant dense<0.000000e+00> : vector<16x32xf32>
    %27 = tpu.matmul %22, %23, %cst_17 {dimension_numbers = #tpu.dot_dimension_numbers<[1], [0], [0], [1], [0, 0, 1, 1], [], []>} : vector<16x32xf32>, vector<32x32xf32>, vector<16x32xf32> -> vector<16x32xf32>
    %28 = vector.broadcast %25 : vector<1x32xf32> to vector<16x32xf32>
    %29 = arith.addf %27, %28 : vector<16x32xf32>
    %30 = vector.extract_strided_slice %29 {offsets = [0, 0], sizes = [16, 16], strides = [1, 1]} : vector<16x32xf32> to vector<16x16xf32>
    %31 = vector.extract_strided_slice %29 {offsets = [0, 16], sizes = [16, 16], strides = [1, 1]} : vector<16x32xf32> to vector<16x16xf32>
    %cst_18 = arith.constant dense<0.000000e+00> : vector<16x16xf32>
    %32 = tpu.matmul %30, %31, %cst_18 {dimension_numbers = #tpu.dot_dimension_numbers<[1], [1], [0], [0], [0, 0, 1, 0], [], []>} : vector<16x16xf32>, vector<16x16xf32>, vector<16x16xf32> -> vector<16x16xf32>
    %cst_19 = arith.constant 2.500000e-01 : f32
    %33 = vector.broadcast %cst_19 : f32 to vector<16x16xf32>
    %34 = arith.mulf %32, %33 : vector<16x16xf32>
    %35 = tpu.iota {dimensions = array<i32: 0>} : vector<16x16xi32>
    %c3_i32 = arith.constant 3 : i32
    %36 = vector.broadcast %c3_i32 : i32 to vector<16x16xi32>
    %37 = arith.shrui %35, %36 : vector<16x16xi32>
    %38 = tpu.iota {dimensions = array<i32: 1>} : vector<16x16xi32>
    %c3_i32_20 = arith.constant 3 : i32
    %39 = vector.broadcast %c3_i32_20 : i32 to vector<16x16xi32>
    %40 = arith.shrui %38, %39 : vector<16x16xi32>
    %41 = arith.cmpi eq, %37, %40 : vector<16x16xi32>
    %cst_21 = arith.constant -1.000000e+30 : f32
    %42 = vector.broadcast %cst_21 : f32 to vector<16x16xf32>
    %43 = arith.select %41, %34, %42 : vector<16x16xi1>, vector<16x16xf32>
    %cst_22 = arith.constant dense<0xFF800000> : vector<16xf32>
    %44 = vector.multi_reduction <maximumf>, %43, %cst_22 [1] : vector<16x16xf32> to vector<16xf32>
    %45 = vector.shape_cast %44 : vector<16xf32> to vector<16x1xf32>
    %46 = vector.broadcast %45 : vector<16x1xf32> to vector<16x16xf32>
    %47 = arith.subf %43, %46 : vector<16x16xf32>
    %48 = math.exp %47 : vector<16x16xf32>
    %cst_23 = arith.constant dense<0.000000e+00> : vector<16xf32>
    %49 = vector.multi_reduction <add>, %48, %cst_23 [1] : vector<16x16xf32> to vector<16xf32>
    %50 = vector.shape_cast %49 : vector<16xf32> to vector<16x1xf32>
    %51 = tpu.reciprocal %50 {approx = true} : vector<16x1xf32> -> vector<16x1xf32>
    %52 = vector.broadcast %51 : vector<16x1xf32> to vector<16x16xf32>
    %53 = arith.mulf %48, %52 : vector<16x16xf32>
    %cst_24 = arith.constant dense<0.000000e+00> : vector<16x32xf32>
    %54 = tpu.matmul %53, %22, %cst_24 {dimension_numbers = #tpu.dot_dimension_numbers<[1], [0], [0], [1], [0, 0, 1, 1], [], []>} : vector<16x16xf32>, vector<16x32xf32>, vector<16x32xf32> -> vector<16x32xf32>
    %cst_25 = arith.constant dense<0.000000e+00> : vector<16x8xf32>
    %55 = tpu.matmul %54, %24, %cst_25 {dimension_numbers = #tpu.dot_dimension_numbers<[1], [0], [0], [1], [0, 0, 1, 1], [], []>} : vector<16x32xf32>, vector<32x8xf32>, vector<16x8xf32> -> vector<16x8xf32>
    %56 = vector.broadcast %26 : vector<1x8xf32> to vector<16x8xf32>
    %57 = arith.addf %55, %56 : vector<16x8xf32>
    %c0_26 = arith.constant 0 : index
    %c0_27 = arith.constant 0 : index
    %58 = vector.load %arg6[%c0_26, %c0_27] : memref<16x8xf32, #tpu.memory_space<vmem>>, vector<16x8xf32>
    tpu.vector_store %arg6[%c0_26, %c0_27], %57 {strides = array<i32>} : memref<16x8xf32, #tpu.memory_space<vmem>>, vector<16x8xf32>,
    return
  }
  func.func @transform_0(%arg0: i32) -> (i32, i32) {
    %c0_i32 = arith.constant 0 : i32
    %c0_i32_0 = arith.constant 0 : i32
    %c0_i32_1 = arith.constant 0 : i32
    return %c0_i32, %c0_i32_0 : i32, i32
  }
  func.func @transform_1(%arg0: i32) -> (i32, i32) {
    %c0_i32 = arith.constant 0 : i32
    %c0_i32_0 = arith.constant 0 : i32
    %c0_i32_1 = arith.constant 0 : i32
    return %c0_i32, %c0_i32_0 : i32, i32
  }
  func.func @transform_2(%arg0: i32) -> (i32, i32) {
    %c0_i32 = arith.constant 0 : i32
    %c0_i32_0 = arith.constant 0 : i32
    %c0_i32_1 = arith.constant 0 : i32
    return %c0_i32, %c0_i32_0 : i32, i32
  }
  func.func @transform_3(%arg0: i32) -> (i32, i32) {
    %c0_i32 = arith.constant 0 : i32
    %c0_i32_0 = arith.constant 0 : i32
    %c0_i32_1 = arith.constant 0 : i32
    return %c0_i32, %c0_i32_0 : i32, i32
  }
  func.func @transform_4(%arg0: i32) -> (i32, i32) {
    %c0_i32 = arith.constant 0 : i32
    %c0_i32_0 = arith.constant 0 : i32
    %c0_i32_1 = arith.constant 0 : i32
    return %c0_i32, %c0_i32_0 : i32, i32
  }
  func.func @transform_5(%arg0: i32) -> (i32, i32) {
    %c0_i32 = arith.constant 0 : i32
    %c0_i32_0 = arith.constant 0 : i32
    %c0_i32_1 = arith.constant 0 : i32
    return %c0_i32, %c0_i32_0 : i32, i32
  }
}

</mosaic_0001>

<bundles_post_ra>
// kernel: tpu_custom_call.1
= control target key start
LH: loop header
LB: loop body
LE: loop exit
PB: predicated region body
PF: predicated region fallthrough
CT: control target
= control target key end

     0   :  { %v867_v0 = vmov 0   ;;  %v868_v9 = vmov 1   ;;  %v869_v13 = vmov 2   ;;  %vm71_vm0 = vcmask 1043456   ;;  %s872_s6 = smov 96   ;;  %s1024_s0 = inlined_call_operand.vmem [shape: s32[16,3], index: 0, kind: input, shape index: {}]   ;;  %s1025_s1 = inlined_call_operand.vmem [shape: f32[60,48], index: 1, kind: input, shape index: {}]   ;;  %s1026_s2 = inlined_call_operand.vmem [shape: f32[48,32], index: 2, kind: input, shape index: {}]   ;;  %s1027_s3 = inlined_call_operand.vmem [shape: f32[32,40], index: 3, kind: input, shape index: {}]   ;;  %s1028_s4 = inlined_call_operand.vmem [shape: f32[1,72], index: 4, kind: input, shape index: {}]   ;;  %s1029_s5 = inlined_call_operand.vmem [shape: f32[16,8], index: 5, kind: output, shape index: {}]  }
   0x1   :  { %840 = vset.pattern.permute.xlu1 %v867_v0  ;;  %838 = vset.pattern.permute.xlu0 %v867_v0  ;;  %v23_v1 = vld [vmem:[%s1024_s0 + $0x8] sm:$0xff]  ;;  %v22_v2 = vld [vmem:[%s1024_s0] sm:$0xff]  ;;  %v58_v5 = vld [vmem:[%s1025_s1 + $0x10] sm:$0xff]  ;;  %vm870_vm1 = vmmov 1   ;;  %v20_v28 = vlaneseq  ;;  %vm64_vm12 = vcmask 490496   ;;  %v871_v34 = vmov 0.0  }
   0x2   :  { %v56_v3 = vld [vmem:[%s1025_s1] sm:$0xff]  ;;  %28 = vperm.xlu1 %840, %v23_v1   ;;  %25 = vperm.xlu0 %838, %v22_v2   ;;  %v57_v4 = vld [vmem:[%s1025_s1 + $0x8] sm:$0xff]  ;;  %v59_v6 = vld [vmem:[%s1025_s1 + $0x18] sm:$0xff]  ;;  %vm163_vm14 = vcmask 392192   ;;  %vm254_vm15 = vcmask 261120  }
   0x3   :  { %v774_v7 = vpack.c.bf16 %v57_v4, %v56_v3  ;;  %v778_v8 = vpack.c.bf16 %v59_v6, %v58_v5  ;;  %v60_v10 = vld [vmem:[%s1025_s1 + $0x20] sm:$0xff]  ;;  %v61_v11 = vld [vmem:[%s1025_s1 + $0x28] sm:$0xff]  ;;  %v62_v14 = vld [vmem:[%s1025_s1 + $0x30] sm:$0xff]  ;;  %v954_v29 = vand.u32 127, %v20_v28  ;;  %v429_v63 = vshrl.u32 %v20_v28, 7 }
   0x4   :  { %v782_v12 = vpack.c.bf16 %v61_v11, %v60_v10  ;;  %v63_v15 = vld [vmem:[%s1025_s1 + $0x38] sm:$0xf]  ;;  %vm787_vm2 = vmpackc.low %vm71_vm0, %vm870_vm1  ;;  %v151_v17 = vld [vmem:[%s1026_s2] sm:$0xff]  ;;  %vm342_vm0 = vcmask 130048  }
   0x5   :  { %775 = vmatprep.subr.bf16.mxu0 %v774_v7  ;;  %v786_v16 = vpack.c.bf16 %v63_v15, %v62_v14  ;;  %v152_v18 = vld [vmem:[%s1026_s2 + $0x8] sm:$0xff]  ;;  %v153_v19 = vld [vmem:[%s1026_s2 + $0x10] sm:$0xff]  ;;  %v154_v21 = vld [vmem:[%s1026_s2 + $0x18] sm:$0xff]  ;;  %v430_v0 = vadd.s32 8, %v429_v63  ;;  %v431_v3 = vshrl.u32 %v429_v63, 3 }
   0x6   :  { %841 = vset.pattern.permute.xlu1 %v868_v9  ;;  %839 = vset.pattern.permute.xlu0 %v868_v9  ;;  %v792_v20 = vpack.c.bf16 %v152_v18, %v151_v17  ;;  %v796_v22 = vpack.c.bf16 %v154_v21, %v153_v19  ;;  %v155_v23 = vld [vmem:[%s1026_s2 + $0x20] sm:$0xff]  ;;  %v156_v24 = vld [vmem:[%s1026_s2 + $0x28] sm:$0xff]  ;;  %v977_v42 = vld [vmem:[%s1027_s3 + $0x10] sm:$0xff] }
   0x7   :  { %36 = vperm.xlu1 %841, %v23_v1   ;;  %33 = vperm.xlu0 %839, %v22_v2   ;;  %v800_v25 = vpack.c.bf16 %v156_v24, %v155_v23  ;;  %v965_v37 = vld [vmem:[%s1027_s3] sm:$0xff]  ;;  %v970_v38 = vld [vmem:[%s1027_s3 + $0x8] sm:$0xff]  ;;  %v982_v43 = vld [vmem:[%s1027_s3 + $0x18] sm:$0xff]  ;;  %s873_s3 = smov 112  }
   0x8   :  { %777 = vmatpush3.bf16.msra.mxu0 %v774_v7  ;;  %793 = vmatprep.subr.bf16.mxu1 %v792_v20  ;;  %v804_v39 = vpack.c.bf16 %v970_v38, %v965_v37  ;;  %v808_v44 = vpack.c.bf16 %v982_v43, %v977_v42  ;;  %v989_v45 = vld [vmem:[%s1028_s4] ss:$0 sm:$0xff]  ;;  %vm813_vm1 = vmpackc.low %vm342_vm0, %vm342_vm0  ;;  %v854_v23 = vpack.i.bf16 %v982_v43, %v977_v42  ;;  %s874_s4 = smov 64  }
   0x9   :  { %779 = vmatprep.subr.bf16.mxu0 %v778_v8  ;;  %795 = vmatpush3.bf16.msra.mxu1 %v792_v20 }
   0xa   :  { %797 = vmatprep.subr.bf16.mxu1 %v796_v22 }
   0xb   :  { %842 = vset.pattern.permute.xlu1 %v869_v13  ;;  %843 = vset.pattern.permute.xlu0 %v869_v13 }
   0xc   :  { %43 = vperm.xlu1 %842, %v22_v2   ;;  %46 = vperm.xlu0 %843, %v23_v1   ;;  %v432_v1 = vshrl.u32 %v430_v0, 3  ;;  %v433_v2 = vshrl.u32 %v954_v29, 3 }
   0xd   :  { %781 = vmatpush3.bf16.msra.mxu0 %v778_v8  ;;  %799 = vmatpush3.bf16.msra.mxu1 %v796_v22  ;;  %v849_v22 = vpack.i.bf16 %v970_v38, %v965_v37 }
   0xe   :  { %783 = vmatprep.subr.bf16.mxu0 %v782_v12  ;;  %801 = vmatprep.subr.bf16.mxu1 %v800_v25 }
  0x10   :  { %251 = vrot.lane.b32.xlu1 %v989_v45, %s872_s6 }
  0x11   :  { %785 = vmatpush3.bf16.msra.mxu0 %v782_v12  ;;  %803 = vmatpush3.bf16.msra.mxu1 %v800_v25 }
  0x12   :  { %788 = vmatprep.subr.msk.bf16.mxu0 %vm787_vm2, %v786_v16  ;;  %805 = vmatprep.subr.bf16.mxu1 %v804_v39 }
  0x15   :  { %791 = vmatpush3.bf16.msk.msra.mxu0 %vm787_vm2, %v786_v16  ;;  %vm435_vm2 = vcmp.eq.s32.totalorder %v432_v1, %v433_v2 }
  0x81   :  { %v29_v26 = vpop.permute.xlu1 %28  ;;  %v26_v27 = vpop.permute.xlu0 %25 }
  0x82   :  { %vm31_vm5 = vcmp.eq.s32.totalorder %v954_v29, %v29_v26  ;;  %vm30_vm6 = vcmp.eq.s32.totalorder %v954_v29, %v26_v27 }
  0x86   :  { %v37_v30 = vpop.permute.xlu1 %36  ;;  %v34_v31 = vpop.permute.xlu0 %33 }
  0x87   :  { %vm39_vm3 = vcmp.eq.s32.totalorder %v954_v29, %v37_v30  ;;  %vm38_vm4 = vcmp.eq.s32.totalorder %v954_v29, %v34_v31 }
  0x88   :  { %vm41_vm7 = vmor %vm31_vm5, %vm39_vm3  ;;  %vm434_vm3 = vcmp.eq.s32.totalorder %v431_v3, %v433_v2 }
  0x89   :  { %vm40_vm8 = vmor %vm30_vm6, %vm38_vm4  ;;  %vm641_vm4 = vcmask 64512  }
  0x8b   :  { %v44_v32 = vpop.permute.xlu1 %43  ;;  %v47_v33 = vpop.permute.xlu0 %46 }
  0x8c   :  { %vm48_vm9 = vcmp.eq.s32.totalorder %v954_v29, %v44_v32  ;;  %vm49_vm10 = vcmp.eq.s32.totalorder %v954_v29, %v47_v33 }
  0x8d   :  { %vm51_vm11 = vmor %vm41_vm7, %vm49_vm10 }
  0x8e   :  { %vm50_vm13 = vmor %vm40_vm8, %vm48_vm9  ;;  %v649_v35 = vsel %vm51_vm11, 1.0, %v871_v34 }
  0x8f   :  { %v648_v36 = vsel %vm50_vm13, 1.0, %v871_v34  ;;  %v252_v53 = vpop.permute.xlu1 %251 }
  0x90   :  { %720 = vmatprep.mubr.msk.f32.mxu0 %vm64_vm12, %v648_v36 }
  0x91   :  { %721 = vmatmul.mubr.msk.f32.vlgmr.msra.gmra.mrb[0].mxu0 %vm64_vm12, %v649_v35 }
 0x164   :  { %v722_v40 = vpop.f32.mrb[0].mxu0 }
 0x165   :  { %v141_v41 = vpop.f32.mrb[1].mxu0 }
 0x166   :  { %735 = vmatprep.mubr.msk.f32.mxu1 %vm163_vm14, %v141_v41 }
 0x167   :  { %736 = vmatmul.mubr.msk.f32.vlgmr.msra.gmra.mrb[0].mxu1 %vm163_vm14, %v722_v40 }
 0x168   :  { %807 = vmatpush3.bf16.msra.mxu1 %v804_v39 }
 0x169   :  { %809 = vmatprep.subr.bf16.mxu1 %v808_v44 }
 0x16c   :  { %811 = vmatpush3.bf16.msra.mxu1 %v808_v44 }
 0x23a   :  { %v737_v46 = vpop.f32.mrb[0].mxu1 }
 0x23b   :  { %v242_v47 = vadd.f32 %v737_v46, %v989_v45  ;;  %v236_v48 = vpop.f32.mrb[1].mxu1 }
 0x23c   :  { %v237_v49 = vadd.f32 %v989_v45, %v236_v48 }
 0x23d   :  { %v246_v50 = vmax.f32 %v242_v47, 0.0 }
 0x23e   :  { %v245_v51 = vmax.f32 %v237_v49, 0.0 }
 0x240   :  { %v818_v52 = vpack.c.bf16 %v246_v50, %v245_v51  ;;  %746 = vmatprep.mubr.msk.f32.mxu1 %vm254_vm15, %v245_v51 }
 0x241   :  { %747 = vmatmul.mubr.msk.f32.vlgmr.msra.gmra.mrb[2].mxu1 %vm254_vm15, %v246_v50 }
 0x242   :  { %819 = vmatprep.subr.bf16.mxu1 %v818_v52 }
 0x243   :  { %821 = vmatpush3.bf16.msra.mxu1 %v818_v52 }
 0x314   :  { %v748_v54 = vpop.f32.mrb[2].mxu1 }
 0x315   :  { %v333_v55 = vadd.f32 %v748_v54, %v252_v53  ;;  %v327_v56 = vpop.f32.mrb[3].mxu1 }
 0x316   :  { %v328_v57 = vadd.f32 %v327_v56, %v252_v53 }
 0x318   :  { %v844_v58 = vpack.i.bf16 %v333_v55, %v328_v57  ;;  %753 = vmatprep.mubr.msk.f32.mxu0 %vm342_vm0, %v328_v57 }
 0x31a   :  { %845 = vrot.lane.b32.xlu1 %v844_v58, %s873_s3 }
 0x38c   :  { %v846_v59 = vpop.permute.xlu1 %845 }
 0x38d   :  { %v848_v60 = vunpack.i.h.bf16 %v846_v59  ;;  %v847_v61 = vunpack.i.l.bf16 %v846_v59 }
 0x38f   :  { %v812_v62 = vpack.c.bf16 %v848_v60, %v847_v61 }
 0x391   :  { %814 = vmatprep.subr.msk.bf16.mxu0 %vm813_vm1, %v812_v62 }
 0x392   :  { %817 = vmatpush3.bf16.xpose.msk.msra.mxu0 %vm813_vm1, %v812_v62 }
 0x399   :  { %754 = vmatmul.mubr.msk.f32.vlgmr.msra.gmra.mrb[2].mxu0 %vm342_vm0, %v333_v55 }
 0x46c   :  { %v755_v4 = vpop.f32.mrb[2].mxu0 }
 0x46d   :  { %v427_v5 = vmul.f32 0.25, %v755_v4  ;;  %v417_v6 = vpop.f32.mrb[3].mxu0 }
 0x46e   :  { %v426_v7 = vmul.f32 0.25, %v417_v6 }
 0x46f   :  { %v437_v8 = vsel %vm435_vm2, %v427_v5, -1e+30 }
 0x470   :  { %v441_v9 = vsel %vm342_vm0, %v437_v8, -inf  ;;  %v436_v10 = vsel %vm434_vm3, %v426_v7, -1e+30 }
 0x471   :  { %442 = vmax.xlane.f32.xlu1 %v441_v9  ;;  %v438_v11 = vsel %vm342_vm0, %v436_v10, -inf }
 0x472   :  { %439 = vmax.xlane.f32.xlu0 %v438_v11 }
 0x482   :  { %850 = vrot.lane.b32.xlu1 %v849_v22, %s872_s6 }
 0x486   :  { %557 = vrot.lane.b32.xlu1 %v989_v45, %s874_s4 }
 0x4fe   :  { %v443_v12 = vpop.xlane.xlu1 %442 }
 0x4ff   :  { %v445_v13 = vsub.f32 %v437_v8, %v443_v12  ;;  %v440_v14 = vpop.xlane.xlu0 %439 }
 0x500   :  { %v444_v15 = vsub.f32 %v436_v10, %v440_v14 }
 0x501   :  { %v448_v16 = vmul.f32 1.442695, %v445_v13 }
 0x502   :  { %v446_v17 = vmul.f32 1.442695, %v444_v15  ;;  %v851_v26 = vpop.permute.xlu1 %850 }
 0x503   :  { %v853_v27 = vunpack.i.h.bf16 %v851_v26  ;;  %v852_v28 = vunpack.i.l.bf16 %v851_v26 }
 0x504   :  { %859 = vpow2.f32 %v446_v17 }
 0x505   :  { %861 = vpow2.f32 %v448_v16  ;;  %v822_v30 = vpack.c.bf16 %v853_v27, %v852_v28 }
 0x506   :  { %v558_v40 = vpop.permute.xlu1 %557 }
 0x507   :  { %823 = vmatprep.subr.bf16.mxu0 %v822_v30 }
 0x508   :  { %825 = vmatpush3.bf16.msra.mxu0 %v822_v30 }
 0x50e   :  { %v860_v18 = vpop.eup %859 }
 0x50f   :  { %v450_v19 = vsel %vm342_vm0, %v860_v18, 0.0  ;;  %v862_v20 = vpop.eup %861 }
 0x510   :  { %451 = vadd.xlane.f32.xlu0 %v450_v19  ;;  %v453_v21 = vsel %vm342_vm0, %v862_v20, 0.0 }
 0x514   :  { %454 = vadd.xlane.f32.xlu0 %v453_v21 }
 0x52a   :  { %855 = vrot.lane.b32.xlu0 %v854_v23, %s872_s6 }
 0x59d   :  { %v452_v24 = vpop.xlane.xlu0 %451 }
 0x59e   :  { %863 = vrcp.f32 %v452_v24 }
 0x5a1   :  { %v455_v25 = vpop.xlane.xlu0 %454 }
 0x5a2   :  { %865 = vrcp.f32 %v455_v25 }
 0x5a5   :  { %v856_v29 = vpop.permute.xlu0 %855 }
 0x5a6   :  { %v858_v31 = vunpack.i.h.bf16 %v856_v29  ;;  %v857_v32 = vunpack.i.l.bf16 %v856_v29 }
 0x5a8   :  { %v864_v33 = vpop.eup %863  ;;  %v826_v34 = vpack.c.bf16 %v858_v31, %v857_v32 }
 0x5a9   :  { %v458_v35 = vmul.f32 %v864_v33, %v860_v18 }
 0x5aa   :  { %827 = vmatprep.subr.bf16.mxu0 %v826_v34 }
 0x5ab   :  { %760 = vmatprep.mubr.msk.f32.mxu1 %vm342_vm0, %v458_v35  ;;  %829 = vmatpush3.bf16.msra.mxu0 %v826_v34 }
 0x5ac   :  { %v866_v36 = vpop.eup %865 }
 0x5ad   :  { %v459_v37 = vmul.f32 %v866_v36, %v862_v20 }
 0x5af   :  { %761 = vmatmul.mubr.msk.f32.vlgmr.msra.gmra.mrb[4].mxu1 %vm342_vm0, %v459_v37 }
 0x682   :  { %v762_v38 = vpop.f32.mrb[4].mxu1 }
 0x683   :  { %v532_v39 = vpop.f32.mrb[5].mxu1 }
 0x684   :  { %771 = vmatprep.mubr.msk.f32.mxu0 %vm254_vm15, %v532_v39 }
 0x685   :  { %772 = vmatmul.mubr.msk.f32.vlgmr.msra.gmra.mrb[4].mxu0 %vm254_vm15, %v762_v38 }
 0x758   :  { %v773_v41 = vpop.f32.mrb[4].mxu0 }
 0x759   :  { %v638_v42 = vadd.f32 %v773_v41, %v558_v40  ;;  %v632_v43 = vpop.f32.mrb[5].mxu0 }
 0x75a   :  { %v633_v44 = vadd.f32 %v632_v43, %v558_v40 }
 0x75b   :  { %643 = vst.msk [vmem:[%s1029_s5 + $0x8] sm:$0xff] %vm641_vm4, %v638_v42 }
 0x75c   :  { %642 = vst.msk [vmem:[%s1029_s5] sm:$0xff] %vm641_vm4, %v633_v44 }

</bundles_post_ra>
